<compile_context>
chip_gen: v7x
topology: tpu7x:2x2x1
jax: 0.10.0
libtpu: 0.0.40
codegen_flags: <defaults>
</compile_context>

<pallas_src>
from collections import OrderedDict

import jax
import jax.numpy as jnp
from jax.experimental import pallas as pl
from jax.experimental.pallas import tpu as pltpu

LANE = 128  # TPU lane width


# ----------------------------------------------------------------------------
# Pallas kernel: fused (tm, Kpad) x (Kpad, Cpad) matmul + bias + ReLU.
# All operands lane-dense (Kpad = Cpad = 128), bf16 in/out, f32 accumulation.
# ----------------------------------------------------------------------------
def _matmul_bias_relu_kernel(p_ref, w_ref, b_ref, o_ref):
    # p_ref: (tm, Kpad)   bf16 im2col patches (zero-padded K)
    # w_ref: (Kpad, Cpad) bf16 folded conv*BN weights (zero-padded K and Cout)
    # b_ref: (1, Cpad)    f32 folded bias (zero-padded Cout)
    # o_ref: (tm, Cpad)   bf16 lane-dense output tile
    acc = jnp.dot(p_ref[...], w_ref[...], preferred_element_type=jnp.float32)
    acc = jnp.maximum(acc + b_ref[...], 0.0)      # bias + ReLU in f32
    o_ref[...] = acc.astype(o_ref.dtype)          # unmasked 128-lane stores


def _im2col_patches_bf16(x_nhwc, kpad):
    """3x3 SAME-padding im2col in the wrapper (XLA), tap order (dy, dx, cin).

    Returns (B*H*W, kpad) bf16 with columns [9*Cin:kpad] zero-padded so the
    kernel LHS is a full lane-dense tile.
    """
    B, H, W, Cin = x_nhwc.shape
    xp = jnp.pad(x_nhwc, ((0, 0), (1, 1), (1, 1), (0, 0)))
    taps = [xp[:, dy:dy + H, dx:dx + W, :] for dy in range(3) for dx in range(3)]
    patches = jnp.concatenate(taps, axis=-1).reshape(B * H * W, 9 * Cin)
    patches = jnp.pad(patches, ((0, 0), (0, kpad - 9 * Cin)))
    return patches.astype(jnp.bfloat16)


@jax.jit
def conv3x3_bn_relu_pallas(x_nhwc, w_packed, b_packed):
    """3x3 same-padding conv + folded BN + ReLU via one Pallas matmul kernel.

    x_nhwc:   (B, H, W, Cin) f32, channels-last.
    w_packed: (Kpad, Cpad)   bf16 im2col weights (BN folded, K & Cout padded).
    b_packed: (1, Cpad)      f32 folded bias (Cout padded).
    Returns   (B, H, W, Cpad) bf16, lane-padded (consumer slices to logical Cout).
    """
    B, H, W, Cin = x_nhwc.shape
    Kpad, Cpad = w_packed.shape
    assert Kpad % LANE == 0 and Cpad % LANE == 0 and Kpad >= 9 * Cin

    patches = _im2col_patches_bf16(x_nhwc, Kpad)      # (B*H*W, Kpad) bf16
    m_total = B * H * W
    # Fold batch into M (one tall matmul).  Tile M at 256 so the grid axis can
    # be split across v7x's two TensorCores; on v5e/v6e the extra grid step
    # costs ~0.35 us which is noise at this size.
    tm = 256 if m_total % 256 == 0 else m_total

    y = pl.pallas_call(
        _matmul_bias_relu_kernel,
        out_shape=jax.ShapeDtypeStruct((m_total, Cpad), jnp.bfloat16),
        grid_spec=pltpu.PrefetchScalarGridSpec(
            num_scalar_prefetch=0,
            grid=(m_total // tm,),
            in_specs=[
                pl.BlockSpec((tm, Kpad), lambda i: (i, 0)),
                pl.BlockSpec((Kpad, Cpad), lambda i: (0, 0)),
                pl.BlockSpec((1, Cpad), lambda i: (0, 0)),
            ],
            out_specs=pl.BlockSpec((tm, Cpad), lambda i: (i, 0)),
        ),
        compiler_params=pltpu.CompilerParams(
            dimension_semantics=("parallel",),   # M tiles feed both v7x TCs
        ),
    )(patches, w_packed, b_packed)

    # Contiguous (free) reshape back to image layout; padding stays (the
    # consumer fuses the [..., :cout] slice with whatever it does next).
    return y.reshape(B, H, W, Cpad)


# ----------------------------------------------------------------------------
# Synthetic, deterministically-initialized backbone (stands in for the external
# build_backbone(...); conv weight + frozen BN folded into a single w, b).
# ----------------------------------------------------------------------------
class SyntheticBackbone:
    def __init__(self, key, cin=4, cout=32):
        k_w, k_g, k_bta, k_m, k_v = jax.random.split(key, 5)
        conv_w = jax.random.normal(k_w, (3, 3, cin, cout), jnp.float32) * 0.05
        # frozen BatchNorm parameters
        gamma = 1.0 + 0.1 * jax.random.normal(k_g, (cout,), jnp.float32)
        beta = 0.1 * jax.random.normal(k_bta, (cout,), jnp.float32)
        mean = 0.1 * jax.random.normal(k_m, (cout,), jnp.float32)
        var = jnp.abs(jax.random.normal(k_v, (cout,), jnp.float32)) + 1.0
        scale = gamma / jnp.sqrt(var + 1e-5)

        # Fold BN into conv: w' = w * scale (per out-channel), b' = beta - mean*scale.
        w_folded = conv_w * scale[None, None, None, :]           # (3,3,Cin,Cout) f32
        b_folded = beta - mean * scale                           # (Cout,) f32

        self.cin = cin
        self.cout = cout
        self.kpad = -(-(9 * cin) // LANE) * LANE                 # 36 -> 128
        self.cpad = -(-cout // LANE) * LANE                      # 32 -> 128

        # Kernel-facing packed parameters (built ONCE at init, not per call):
        #  - im2col weight layout (9*Cin, Cout) in tap order (dy, dx, cin),
        #  - zero-padded K rows (36->128) and out-channel cols (32->128),
        #  - bf16 for the MXU.
        w_im2col = w_folded.reshape(9 * cin, cout)
        self.w_packed = jnp.pad(
            w_im2col,
            ((0, self.kpad - 9 * cin), (0, self.cpad - cout)),
        ).astype(jnp.bfloat16)
        self.b_packed = jnp.pad(b_folded, (0, self.cpad - cout)).reshape(1, self.cpad)

        # f32 copies kept only for the plain-JAX reference check.
        self.w_hwio_f32 = w_folded
        self.b_f32 = b_folded

    def __call__(self, x_nhwc):
        # NHWC end-to-end; returns the lane-padded bf16 feature map (consumers
        # slice [..., :cout] and the slice fuses with downstream ops).
        return conv3x3_bn_relu_pallas(x_nhwc, self.w_packed, self.b_packed)


class SKBackbone:
    """JAX/Pallas port of SKBackbone (forward semantics reproduced exactly)."""

    def __init__(self, key, **kwargs):
        self.backbone = SyntheticBackbone(key)
        self.training = True

    def _forward_train(self, data_dict, kwargs={}):
        # TODO(synk): reference _foward_train computes no losses; it returns an
        # empty OrderedDict, so there is no tensor compute to port here.
        total_losses = OrderedDict()
        return total_losses

    def _forward_val(self, images, kwargs):
        return None  # reference `_forward_val` is `pass`

    def forward(self, data_dict, kwargs={}):
        if self.training:
            return self._forward_train(data_dict, kwargs)
        else:
            return self._forward_val(data_dict, kwargs)


if __name__ == "__main__":
    key = jax.random.PRNGKey(0)
    k_model, k_data = jax.random.split(key)

    model = SKBackbone(k_model, train_allbackbone=False, use_fpn=False,
                       freeze_bn=True)

    # Small deterministic input consistent with an NCHW image batch; converted
    # ONCE at the edge — the model itself stays NHWC end-to-end.
    x_nchw = jax.random.normal(k_data, (2, 4, 16, 16), jnp.float32)  # [B,C,H,W]
    x_nhwc = jnp.transpose(x_nchw, (0, 2, 3, 1))                     # [B,H,W,C]
    data_dict = {"images": x_nchw}

    # Exercise the Pallas-backed backbone hot path (the piece build_backbone
    # would have provided).
    feats_padded = jax.block_until_ready(model.backbone(x_nhwc))
    assert feats_padded.shape == (2, 16, 16, model.backbone.cpad)
    assert feats_padded.dtype == jnp.bfloat16

    # Consumer-side slice to the logical channel count (fuses with the cast).
    feats = feats_padded[..., :model.backbone.cout].astype(jnp.float32)
    assert feats.shape == (2, 16, 16, 32)
    assert bool(jnp.all(feats >= 0.0))          # ReLU output
    assert bool(jnp.isfinite(feats).all())
    # Padded channels must be exactly zero (zero weight cols, zero bias, ReLU).
    assert bool(jnp.all(feats_padded[..., model.backbone.cout:] == 0))

    # Numerical check against a plain-JAX f32 reference conv (bf16 matmul
    # operands + bf16 output in the kernel -> loose tolerance).
    ref = jax.lax.conv_general_dilated(
        x_nhwc, model.backbone.w_hwio_f32,
        window_strides=(1, 1), padding="SAME",
        dimension_numbers=("NHWC", "HWIO", "NHWC"))
    ref = jnp.maximum(ref + model.backbone.b_f32, 0.0)
    max_err = float(jnp.max(jnp.abs(feats - ref)))
    assert max_err < 5e-2, f"max abs error vs reference conv: {max_err}"

    # Exact SKBackbone.forward semantics.
    model.training = True
    train_out = model.forward(data_dict)
    assert isinstance(train_out, OrderedDict) and len(train_out) == 0

    model.training = False
    eval_out = model.forward(data_dict)
    assert eval_out is None

    print("KERNEL_OK")
</pallas_src>

<mosaic_0001>
module attributes {stable_mosaic.version = 11 : i64} {
  func.func @_matmul_bias_relu_kernel(%arg0: i32, %arg1: memref<256x128xbf16, #tpu.memory_space<vmem>>, %arg2: memref<128x128xbf16, #tpu.memory_space<vmem>>, %arg3: memref<1x128xf32, #tpu.memory_space<vmem>>, %arg4: memref<256x128xbf16, #tpu.memory_space<vmem>>) attributes {dimension_semantics = [#tpu.dimension_semantics<parallel>], iteration_bounds = array<i64: 2>, scalar_prefetch = 0 : i64, scratch_operands = 0 : i64, tpu.core_type = #tpu.core_type<tc>, window_params = [{transform_indices = @transform_0, window_bounds = array<i64: 256, 128>}, {pipeline_mode = #tpu.pipeline_mode<synchronous>, transform_indices = @transform_1, window_bounds = array<i64: 128, 128>}, {pipeline_mode = #tpu.pipeline_mode<synchronous>, transform_indices = @transform_2, window_bounds = array<i64: 1, 128>}, {transform_indices = @transform_3, window_bounds = array<i64: 256, 128>}]} {
    %c0 = arith.constant 0 : index
    %c0_0 = arith.constant 0 : index
    %0 = vector.load %arg1[%c0, %c0_0] : memref<256x128xbf16, #tpu.memory_space<vmem>>, vector<256x128xbf16>
    %c0_1 = arith.constant 0 : index
    %c0_2 = arith.constant 0 : index
    %1 = vector.load %arg2[%c0_1, %c0_2] : memref<128x128xbf16, #tpu.memory_space<vmem>>, vector<128x128xbf16>
    %cst = arith.constant dense<0.000000e+00> : vector<256x128xf32>
    %2 = tpu.matmul %0, %1, %cst {dimension_numbers = #tpu.dot_dimension_numbers<[1], [0], [0], [1], [0, 0, 1, 1], [], []>} : vector<256x128xbf16>, vector<128x128xbf16>, vector<256x128xf32> -> vector<256x128xf32>
    %c0_3 = arith.constant 0 : index
    %c0_4 = arith.constant 0 : index
    %3 = vector.load %arg3[%c0_3, %c0_4] : memref<1x128xf32, #tpu.memory_space<vmem>>, vector<1x128xf32>
    %4 = vector.broadcast %3 : vector<1x128xf32> to vector<256x128xf32>
    %5 = arith.addf %2, %4 : vector<256x128xf32>
    %cst_5 = arith.constant 0.000000e+00 : f32
    %6 = vector.broadcast %cst_5 : f32 to vector<256x128xf32>
    %7 = arith.maximumf %5, %6 : vector<256x128xf32>
    %8 = arith.truncf %7 : vector<256x128xf32> to vector<256x128xbf16>
    %c0_6 = arith.constant 0 : index
    %c0_7 = arith.constant 0 : index
    %9 = vector.load %arg4[%c0_6, %c0_7] : memref<256x128xbf16, #tpu.memory_space<vmem>>, vector<256x128xbf16>
    tpu.vector_store %arg4[%c0_6, %c0_7], %8 {strides = array<i32>} : memref<256x128xbf16, #tpu.memory_space<vmem>>, vector<256x128xbf16>,
    return
  }
  func.func @transform_0(%arg0: i32) -> (i32, i32) {
    %c0_i32 = arith.constant 0 : i32
    %c0_i32_0 = arith.constant 0 : i32
    return %arg0, %c0_i32 : i32, i32
  }
  func.func @transform_1(%arg0: i32) -> (i32, i32) {
    %c0_i32 = arith.constant 0 : i32
    %c0_i32_0 = arith.constant 0 : i32
    %c0_i32_1 = arith.constant 0 : i32
    return %c0_i32, %c0_i32_0 : i32, i32
  }
  func.func @transform_2(%arg0: i32) -> (i32, i32) {
    %c0_i32 = arith.constant 0 : i32
    %c0_i32_0 = arith.constant 0 : i32
    %c0_i32_1 = arith.constant 0 : i32
    return %c0_i32, %c0_i32_0 : i32, i32
  }
  func.func @transform_3(%arg0: i32) -> (i32, i32) {
    %c0_i32 = arith.constant 0 : i32
    %c0_i32_0 = arith.constant 0 : i32
    return %arg0, %c0_i32 : i32, i32
  }
}

</mosaic_0001>

<bundles_post_ra>
// kernel: conv3x3_bn_relu_pallas.1
= control target key start
LH: loop header
LB: loop body
LE: loop exit
PB: predicated region body
PF: predicated region fallthrough
CT: control target
= control target key end

     0   :  { %8 = vsyncpa [#allocation3], 0  ;;  %s1442_s0 = inlined_call_operand.vmem [shape: bf16[512,128], index: 0, kind: input, shape index: {}]   ;;  %s1443_s1 = inlined_call_operand.vmem [shape: bf16[128,128], index: 1, kind: input, shape index: {}]   ;;  %s1444_s2 = inlined_call_operand.vmem [shape: f32[1,128], index: 2, kind: input, shape index: {}]   ;;  %s1445_s3 = inlined_call_operand.hbm [shape: bf16[512,128], index: 3, kind: output, shape index: {}]  }
   0x1   :  { %10 = vsyncpa [#allocation3 + $0x1], 0  ;;  %s1238_s12 = smov 0   ;;  %s1240_s13 = smov 0  }
   0x2   :  { %s1242_s14 = smov 0   ;;  %s1244_s15 = smov 0  }
   0x3 LB: > { %s1259_s16 = sadd.s32 4294967295, %s1213_s15   ;;  %s801_s17 = sadd.s32 4294967294, %s1213_s15   ;;  %s1213_s15 = sphi %s1244_s15, %s1451_s15   ;;  %s1209_s14 = sphi %s1242_s14, %s1450_s14   ;;  %s1205_s13 = sphi %s1240_s13, %s1449_s13   ;;  %s1201_s12 = sphi %s1238_s12, %s1448_s12  }
   0x4   : > { %s1263_s18 = sadd.s32 1, %s1213_s15   ;;  %s91_s19 = sadd.s32 1, %s1209_s14 }
   0x5   : > { %s88_s20 = ssub.s32 %s1213_s15, %s1263_s18  ;;  %p101_p0 = scmp.ne.s32.totalorder %s1209_s14, %s1205_s13 }
   0x6   : > { %p89_p1 = scmp.eq.s32.totalorder %s88_s20, 0  ;;  %p102_p2 = scmp.eq.s32.totalorder %s1259_s16, 1 }
   0x7   : > { %p107_p3 = scmp.ne.s32.totalorder %s1205_s13, %s1201_s12  ;;  %p108_p4 = scmp.eq.s32.totalorder %s801_s17, 1 }
   0x8   : > { %s1274_s21 = scalar_select %p89_p1, %s1209_s14, %s91_s19  }
   0x9   : > { %p1276_p5 = por %p102_p2, %p101_p0  ;;  %p1280_p6 = por %p108_p4, %p107_p3 }
   0xa   : > { %p804_p7 = scmp.ge.s32.totalorder %s1213_s15, 1  ;;  %p141_p8 = scmp.lt.s32.totalorder %s1213_s15, 3 }
   0xc   : > { %p142_p9 = pnand %p804_p7, %p141_p8 }
   0xd   : > { %v1127_v0 = vld [vmem:[%s1443_s1] sm:$0xff] (!%p142_p9)   ;;  %s806_s26 = sshll.u32 (!%p142_p9), %s1259_s16, 5  ;;  %v1128_v1 = vld [vmem:[%s1443_s1 + $0x8] sm:$0xff] (!%p142_p9)   ;;  %v1129_v2 = vld [vmem:[%s1443_s1 + $0x10] sm:$0xff] (!%p142_p9)   ;;  %s162_s29 = sand.u32 (!%p142_p9), 1, %s1205_s13  }
   0xe   : > { %145 = sbr.rel (%p142_p9) target bundleno = 306 (0x132), region = 32  ;;  %p166_p10 = scmp.lt.s32.totalorder (!%p142_p9), %s806_s26, 63  ;;  %1022 = vmatprep.subr.bf16.mxu0 (!%p142_p9), %v1127_v0  ;;  %1070 = vmatprep.subr.bf16.mxu1 (!%p142_p9), %v1127_v0  ;;  %v1130_v3 = vld [vmem:[%s1443_s1 + $0x18] sm:$0xff] (!%p142_p9)   ;;  %v1131_v6 = vld [vmem:[%s1443_s1 + $0x20] sm:$0xff] (!%p142_p9)   ;;  %v1132_v7 = vld [vmem:[%s1443_s1 + $0x28] sm:$0xff] (!%p142_p9)  }
   0xf   : > { %1023 = vmatpush3.bf16.msra.mxu0 (!%p142_p9), %v1127_v0  ;;  %1078 = vmatpush3.bf16.msra.mxu1 (!%p142_p9), %v1127_v0  ;;  %v1133_v8 = vld [vmem:[%s1443_s1 + $0x30] sm:$0xff] (!%p142_p9)   ;;  %v1134_v9 = vld [vmem:[%s1443_s1 + $0x38] sm:$0xff] (!%p142_p9)   ;;  %v1335_v24 = vld [vmem:[%s1444_s2] ss:$0 sm:$0xff] (!%p142_p9)  ;;  %s805_s30 = sshll.u32 (!%p142_p9), %s162_s29, 7  ;;  %s902_s5 = sshll.u32 (!%p142_p9), %s1259_s16, 11 }
  0x10   : > { %1024 = vmatprep.subr.bf16.mxu0 (!%p142_p9), %v1128_v1  ;;  %1071 = vmatprep.subr.bf16.mxu1 (!%p142_p9), %v1128_v1  ;;  %s1391_s16 = scalar_lea.hbm (!%p142_p9), %s1445_s3, %s902_s5  ;;  %s1401_s9 = scalar_lea.sflag (!%p142_p9), [#allocation3], %s162_s29 }
  0x11   : > { %s1215_s11 = smov (!%p142_p9), [#allocation2]  }
  0x12   : > { %s1155_s17 = sshll.u32 (!%p142_p9), %s1215_s11, 4  ;;  %s1156_s17 = int_to_ptr.vmem [resolvable:$false] %s1155_s17 }
  0x13   : > { %1025 = vmatpush3.bf16.msra.mxu0 (!%p142_p9), %v1128_v1  ;;  %1079 = vmatpush3.bf16.msra.mxu1 (!%p142_p9), %v1128_v1  ;;  %s1157_s19 = scalar_lea.vmem (!%p142_p9), %s1156_s17, 4096 }
  0x14   : > { %1026 = vmatprep.subr.bf16.mxu0 (!%p142_p9), %v1129_v2  ;;  %1072 = vmatprep.subr.bf16.mxu1 (!%p142_p9), %v1129_v2 }
  0x15   : > { %s1453_s26 = smov (!%p166_p10, %s806_s26), 63 }
  0x16   : > { %s807_s4 = sshll.u32 %s1453_s26, 2 }
  0x17   : > { %s1299_s7 = scalar_lea.vmem %s1442_s0, %s807_s4  ;;  %1027 = vmatpush3.bf16.msra.mxu0 %v1129_v2  ;;  %1080 = vmatpush3.bf16.msra.mxu1 %v1129_v2  ;;  %s1348_s4 = scalar_lea.vmem [#allocation2], %s805_s30 }
  0x18   : > { %v1135_v4 = vld [vmem:[%s1299_s7] sm:$0xff]   ;;  %1028 = vmatprep.subr.bf16.mxu0 %v1130_v3  ;;  %1073 = vmatprep.subr.bf16.mxu1 %v1130_v3  ;;  %v1137_v10 = vld [vmem:[%s1299_s7 + $0x8] sm:$0xff]   ;;  %v1139_v12 = vld [vmem:[%s1299_s7 + $0x10] sm:$0xff]   ;;  %s739_s6 = sshll.u32 %s1348_s4, 4  ;;  %s1393_s6 = int_to_ptr.vmem [resolvable:$true] %s739_s6 }
  0x19   : > { %v1136_v5 = vld [vmem:[%s1299_s7 + $0x40] sm:$0xff]   ;;  %1038 = vmatprep.mubr.bf16.mxu0 %v1135_v4  ;;  %v1138_v11 = vld [vmem:[%s1299_s7 + $0x48] sm:$0xff]   ;;  %v1140_v13 = vld [vmem:[%s1299_s7 + $0x50] sm:$0xff]   ;;  %s1151_s10 = scalar_lea.vmem %s1393_s6, 2048  ;;  %p1158_p0 = scmp.lt.s32.totalorder %s1393_s6, %s1156_s17 }
  0x1a   : > { %1054 = vmatprep.mubr.bf16.mxu1 %v1136_v5  ;;  %v1141_v14 = vld [vmem:[%s1299_s7 + $0x18] sm:$0xff]   ;;  %v1143_v16 = vld [vmem:[%s1299_s7 + $0x20] sm:$0xff]   ;;  %v1145_v18 = vld [vmem:[%s1299_s7 + $0x28] sm:$0xff]   ;;  %p1152_p11 = scmp.ne.s32.totalorder %s1393_s6, %s1151_s10  ;;  %p1159_p1 = scmp.lt.s32.totalorder %s1157_s19, %s1151_s10 }
  0x1b   : > { %1029 = vmatpush3.bf16.msra.mxu0 %v1130_v3  ;;  %1081 = vmatpush3.bf16.msra.mxu1 %v1130_v3  ;;  %v1142_v15 = vld [vmem:[%s1299_s7 + $0x58] sm:$0xff]   ;;  %v1144_v17 = vld [vmem:[%s1299_s7 + $0x60] sm:$0xff]   ;;  %v1146_v19 = vld [vmem:[%s1299_s7 + $0x68] sm:$0xff]  }
  0x1c   : > { %1030 = vmatprep.subr.bf16.mxu0 %v1131_v6  ;;  %1074 = vmatprep.subr.bf16.mxu1 %v1131_v6  ;;  %v1147_v20 = vld [vmem:[%s1299_s7 + $0x30] sm:$0xff]   ;;  %v1149_v22 = vld [vmem:[%s1299_s7 + $0x38] sm:$0xff]   ;;  %p1153_p12 = pnand %p1152_p11, %p1276_p5  ;;  %p1160_p2 = por %p1159_p1, %p1158_p0 }
  0x1d   : > { %v1148_v21 = vld [vmem:[%s1299_s7 + $0x70] sm:$0xff]   ;;  %v1150_v23 = vld [vmem:[%s1299_s7 + $0x78] sm:$0xff]  }
  0x1e   : > { %p1154_p13 = pneg %p1153_p12 }
  0x1f   : > { %1031 = vmatpush3.bf16.msra.mxu0 %v1131_v6  ;;  %1082 = vmatpush3.bf16.msra.mxu1 %v1131_v6 }
  0x20   : > { %1032 = vmatprep.subr.bf16.mxu0 %v1132_v7  ;;  %1075 = vmatprep.subr.bf16.mxu1 %v1132_v7  ;;  %p1161_p3 = pnand %p1160_p2, %p1154_p13 }
  0x23   : > { %1033 = vmatpush3.bf16.msra.mxu0 %v1132_v7  ;;  %1083 = vmatpush3.bf16.msra.mxu1 %v1132_v7 }
  0x24   : > { %1034 = vmatprep.subr.bf16.mxu0 %v1133_v8  ;;  %1076 = vmatprep.subr.bf16.mxu1 %v1133_v8 }
  0x27   : > { %1035 = vmatpush3.bf16.msra.mxu0 %v1133_v8  ;;  %1084 = vmatpush3.bf16.msra.mxu1 %v1133_v8 }
  0x28   : > { %1036 = vmatprep.subr.bf16.mxu0 %v1134_v9  ;;  %1077 = vmatprep.subr.bf16.mxu1 %v1134_v9 }
  0x2b   : > { %1037 = vmatpush3.bf16.msra.mxu0 %v1134_v9  ;;  %1085 = vmatpush3.bf16.msra.mxu1 %v1134_v9 }
  0x2e   : > { %1039 = vmatmul.mubr.bf16.vlgmr.msra.gmra.mrb[0].mxu0 %v1137_v10  ;;  %1055 = vmatmul.mubr.bf16.vlgmr.msra.gmra.mrb[0].mxu1 %v1138_v11 }
  0x2f   : > { %1042 = vmatprep.mubr.bf16.mxu0 %v1139_v12  ;;  %1058 = vmatprep.mubr.bf16.mxu1 %v1140_v13 }
  0x36   : > { %1043 = vmatmul.mubr.bf16.gmra.mrb[4].mxu0 %v1141_v14  ;;  %1059 = vmatmul.mubr.bf16.gmra.mrb[4].mxu1 %v1142_v15 }
  0x37   : > { %1046 = vmatprep.mubr.bf16.mxu0 %v1143_v16  ;;  %1062 = vmatprep.mubr.bf16.mxu1 %v1144_v17 }
  0x3e   : > { %1047 = vmatmul.mubr.bf16.gmra.mrb[8].mxu0 %v1145_v18  ;;  %1063 = vmatmul.mubr.bf16.gmra.mrb[8].mxu1 %v1146_v19 }
  0x3f   : > { %1050 = vmatprep.mubr.bf16.mxu0 %v1147_v20  ;;  %1066 = vmatprep.mubr.bf16.mxu1 %v1148_v21 }
  0x46   : > { %1051 = vmatmul.mubr.bf16.gmra.mrb[12].mxu0 %v1149_v22  ;;  %1067 = vmatmul.mubr.bf16.gmra.mrb[12].mxu1 %v1150_v23 }
 0x101   : > { %v1040_v25 = vpop.f32.mrb[0].mxu0  ;;  %v1056_v26 = vpop.f32.mrb[0].mxu1 }
 0x102   : > { %v415_v27 = vadd.f32 %v1040_v25, %v1335_v24  ;;  %v479_v28 = vadd.f32 %v1056_v26, %v1335_v24  ;;  %v406_v29 = vpop.f32.mrb[1].mxu0  ;;  %v470_v30 = vpop.f32.mrb[1].mxu1 }
 0x103   : > { %v407_v31 = vadd.f32 %v1335_v24, %v406_v29  ;;  %v471_v32 = vadd.f32 %v1335_v24, %v470_v30  ;;  %v1041_v33 = vpop.f32.mrb[2].mxu0  ;;  %v1057_v34 = vpop.f32.mrb[2].mxu1 }
 0x104   : > { %v418_v35 = vadd.f32 %v1041_v33, %v1335_v24  ;;  %v482_v36 = vadd.f32 %v1057_v34, %v1335_v24  ;;  %v409_v37 = vpop.f32.mrb[3].mxu0  ;;  %v473_v38 = vpop.f32.mrb[3].mxu1  ;;  %v535_v41 = vmax.f32 %v415_v27, 0.0  ;;  %v551_v42 = vmax.f32 %v479_v28, 0.0 }
 0x105   : > { %v410_v39 = vadd.f32 %v1335_v24, %v409_v37  ;;  %v474_v40 = vadd.f32 %v1335_v24, %v473_v38  ;;  %v533_v45 = vmax.f32 %v407_v31, 0.0  ;;  %v549_v46 = vmax.f32 %v471_v32, 0.0 }
 0x106   : > { %v536_v43 = vmax.f32 %v418_v35, 0.0  ;;  %v552_v44 = vmax.f32 %v482_v36, 0.0 }
 0x107   : > { %v534_v47 = vmax.f32 %v410_v39, 0.0  ;;  %v550_v48 = vmax.f32 %v474_v40, 0.0 }
 0x108   : > { %v911_v49 = vpack.c.bf16 %v536_v43, %v535_v41  ;;  %v951_v50 = vpack.c.bf16 %v552_v44, %v551_v42 }
 0x109   : > { %v906_v51 = vpack.c.bf16 %v534_v47, %v533_v45  ;;  %v946_v52 = vpack.c.bf16 %v550_v48, %v549_v46  ;;  %v1044_v53 = vpop.f32.mrb[4].mxu0  ;;  %v1060_v54 = vpop.f32.mrb[4].mxu1 }
 0x10a   : > { %983 = vst [vmem:[%s1348_s4 + $0x8] sm:$0xff] %v911_v49   ;;  %991 = vst [vmem:[%s1348_s4 + $0x48] sm:$0xff] %v951_v50   ;;  %v431_v55 = vadd.f32 %v1044_v53, %v1335_v24  ;;  %v495_v56 = vadd.f32 %v1060_v54, %v1335_v24  ;;  %v422_v57 = vpop.f32.mrb[5].mxu0  ;;  %v486_v58 = vpop.f32.mrb[5].mxu1 }
 0x10b   : > { %907 = vst [vmem:[%s1348_s4] sm:$0xff] %v906_v51   ;;  %990 = vst [vmem:[%s1348_s4 + $0x40] sm:$0xff] %v946_v52   ;;  %v423_v59 = vadd.f32 %v1335_v24, %v422_v57  ;;  %v487_v60 = vadd.f32 %v1335_v24, %v486_v58  ;;  %v1045_v61 = vpop.f32.mrb[6].mxu0  ;;  %v1061_v62 = vpop.f32.mrb[6].mxu1 }
 0x10c   : > { %v434_v63 = vadd.f32 %v1045_v61, %v1335_v24  ;;  %v498_v0 = vadd.f32 %v1061_v62, %v1335_v24  ;;  %v425_v1 = vpop.f32.mrb[7].mxu0  ;;  %v489_v2 = vpop.f32.mrb[7].mxu1  ;;  %v539_v5 = vmax.f32 %v431_v55, 0.0  ;;  %v555_v6 = vmax.f32 %v495_v56, 0.0 }
 0x10d   : > { %v426_v3 = vadd.f32 %v1335_v24, %v425_v1  ;;  %v490_v4 = vadd.f32 %v1335_v24, %v489_v2  ;;  %v537_v9 = vmax.f32 %v423_v59, 0.0  ;;  %v553_v10 = vmax.f32 %v487_v60, 0.0 }
 0x10e   : > { %v540_v7 = vmax.f32 %v434_v63, 0.0  ;;  %v556_v8 = vmax.f32 %v498_v0, 0.0 }
 0x10f   : > { %v538_v11 = vmax.f32 %v426_v3, 0.0  ;;  %v554_v12 = vmax.f32 %v490_v4, 0.0 }
 0x110   : > { %v921_v13 = vpack.c.bf16 %v540_v7, %v539_v5  ;;  %v961_v14 = vpack.c.bf16 %v556_v8, %v555_v6 }
 0x111   : > { %v916_v15 = vpack.c.bf16 %v538_v11, %v537_v9  ;;  %v956_v16 = vpack.c.bf16 %v554_v12, %v553_v10  ;;  %v1048_v17 = vpop.f32.mrb[8].mxu0  ;;  %v1064_v18 = vpop.f32.mrb[8].mxu1 }
 0x112   : > { %985 = vst [vmem:[%s1348_s4 + $0x18] sm:$0xff] %v921_v13   ;;  %993 = vst [vmem:[%s1348_s4 + $0x58] sm:$0xff] %v961_v14   ;;  %v447_v19 = vadd.f32 %v1048_v17, %v1335_v24  ;;  %v511_v20 = vadd.f32 %v1064_v18, %v1335_v24  ;;  %v438_v21 = vpop.f32.mrb[9].mxu0  ;;  %v502_v22 = vpop.f32.mrb[9].mxu1 }
 0x113   : > { %984 = vst [vmem:[%s1348_s4 + $0x10] sm:$0xff] %v916_v15   ;;  %992 = vst [vmem:[%s1348_s4 + $0x50] sm:$0xff] %v956_v16   ;;  %v439_v23 = vadd.f32 %v1335_v24, %v438_v21  ;;  %v503_v25 = vadd.f32 %v1335_v24, %v502_v22  ;;  %v1049_v26 = vpop.f32.mrb[10].mxu0  ;;  %v1065_v27 = vpop.f32.mrb[10].mxu1 }
 0x114   : > { %v450_v28 = vadd.f32 %v1049_v26, %v1335_v24  ;;  %v514_v29 = vadd.f32 %v1065_v27, %v1335_v24  ;;  %v441_v30 = vpop.f32.mrb[11].mxu0  ;;  %v505_v31 = vpop.f32.mrb[11].mxu1  ;;  %v543_v34 = vmax.f32 %v447_v19, 0.0  ;;  %v559_v35 = vmax.f32 %v511_v20, 0.0 }
 0x115   : > { %v442_v32 = vadd.f32 %v1335_v24, %v441_v30  ;;  %v506_v33 = vadd.f32 %v1335_v24, %v505_v31  ;;  %v541_v38 = vmax.f32 %v439_v23, 0.0  ;;  %v557_v39 = vmax.f32 %v503_v25, 0.0 }
 0x116   : > { %v544_v36 = vmax.f32 %v450_v28, 0.0  ;;  %v560_v37 = vmax.f32 %v514_v29, 0.0 }
 0x117   : > { %v542_v40 = vmax.f32 %v442_v32, 0.0  ;;  %v558_v41 = vmax.f32 %v506_v33, 0.0 }
 0x118   : > { %v931_v42 = vpack.c.bf16 %v544_v36, %v543_v34  ;;  %v971_v43 = vpack.c.bf16 %v560_v37, %v559_v35 }
 0x119   : > { %v926_v44 = vpack.c.bf16 %v542_v40, %v541_v38  ;;  %v966_v45 = vpack.c.bf16 %v558_v41, %v557_v39  ;;  %v1052_v46 = vpop.f32.mrb[12].mxu0  ;;  %v1068_v47 = vpop.f32.mrb[12].mxu1 }
 0x11a   : > { %987 = vst [vmem:[%s1348_s4 + $0x28] sm:$0xff] %v931_v42   ;;  %995 = vst [vmem:[%s1348_s4 + $0x68] sm:$0xff] %v971_v43   ;;  %v463_v48 = vadd.f32 %v1052_v46, %v1335_v24  ;;  %v527_v49 = vadd.f32 %v1068_v47, %v1335_v24  ;;  %v454_v50 = vpop.f32.mrb[13].mxu0  ;;  %v518_v51 = vpop.f32.mrb[13].mxu1 }
 0x11b   : > { %986 = vst [vmem:[%s1348_s4 + $0x20] sm:$0xff] %v926_v44   ;;  %994 = vst [vmem:[%s1348_s4 + $0x60] sm:$0xff] %v966_v45   ;;  %v455_v52 = vadd.f32 %v1335_v24, %v454_v50  ;;  %v519_v53 = vadd.f32 %v1335_v24, %v518_v51  ;;  %v1053_v54 = vpop.f32.mrb[14].mxu0  ;;  %v1069_v55 = vpop.f32.mrb[14].mxu1 }
 0x11c   : > { %v466_v56 = vadd.f32 %v1053_v54, %v1335_v24  ;;  %v530_v57 = vadd.f32 %v1069_v55, %v1335_v24  ;;  %v457_v58 = vpop.f32.mrb[15].mxu0  ;;  %v521_v59 = vpop.f32.mrb[15].mxu1  ;;  %v547_v62 = vmax.f32 %v463_v48, 0.0  ;;  %v563_v63 = vmax.f32 %v527_v49, 0.0 }
 0x11d   : > { %v458_v60 = vadd.f32 %v1335_v24, %v457_v58  ;;  %v522_v61 = vadd.f32 %v1335_v24, %v521_v59  ;;  %v545_v2 = vmax.f32 %v455_v52, 0.0  ;;  %v561_v3 = vmax.f32 %v519_v53, 0.0 }
 0x11e   : > { %v548_v0 = vmax.f32 %v466_v56, 0.0  ;;  %v564_v1 = vmax.f32 %v530_v57, 0.0 }
 0x11f   : > { %v546_v4 = vmax.f32 %v458_v60, 0.0  ;;  %v562_v5 = vmax.f32 %v522_v61, 0.0 }
 0x120   : > { %v941_v6 = vpack.c.bf16 %v548_v0, %v547_v62  ;;  %v981_v7 = vpack.c.bf16 %v564_v1, %v563_v63 }
 0x121   : > { %v936_v24 = vpack.c.bf16 %v546_v4, %v545_v2  ;;  %v976_v8 = vpack.c.bf16 %v562_v5, %v561_v3 }
 0x122   : > { %989 = vst [vmem:[%s1348_s4 + $0x38] sm:$0xff] %v941_v6   ;;  %997 = vst [vmem:[%s1348_s4 + $0x78] sm:$0xff] %v981_v7  }
 0x123   : > { %988 = vst [vmem:[%s1348_s4 + $0x30] sm:$0xff] %v936_v24   ;;  %996 = vst [vmem:[%s1348_s4 + $0x70] sm:$0xff] %v976_v8  }
 0x124   : > { %1164 = shalt.err (!%p1161_p3)
}
 0x125   : > { %s1165_s20 = scalar_lea.hbm %s1391_s16, 2048  ;;  %s1169_s26 = scalar_lea.hbm %s1445_s3, 4096 }
 0x126   : > { %p1166_p4 = scmp.ne.s32.totalorder %s1391_s16, %s1165_s20  ;;  %p1170_p9 = scmp.lt.u32.totalorder %s1391_s16, %s1445_s3 }
 0x127   : > { %p1171_p10 = scmp.lt.u32.totalorder %s1169_s26, %s1165_s20  ;;  %p1173_p12 = scmp.lt.u32.totalorder %s1165_s20, %s1391_s16 }
 0x128   : > { %p1167_p7 = pnand %p1166_p4, %p1276_p5 }
 0x129   : > { %p1172_p11 = por %p1171_p10, %p1170_p9 }
 0x12a   : > { %p1168_p8 = pneg %p1167_p7 }
 0x12b   : > { %p1174_p13 = por %p1173_p12, %p1172_p11 }
 0x12d   : > { %p1175_p0 = pnand %p1174_p13, %p1168_p8 }
 0x12f   : > { %1178 = shalt.err (!%p1175_p0)
}
 0x130   : > { %s1216_s29 = smov 64   ;;  %s1217_s30 = smov 4  }
 0x131   : > { %1086 = dma.vmem_to_hbm [thread:$0]  (%p1276_p5), %s1393_s6, 2048, %s1391_s16, %s1401_s9, %s1216_s29, %s1216_s29, %s1217_s30  }
 0x132 PF: > { %p1092_p1 = scmp.ge.s32.totalorder %s1213_s15, 2  ;;  %s754_s4 = sand.u32 1, %s1201_s12  }
 0x133   : > { %s755_s5 = scalar_lea.sflag [#allocation3], %s754_s4 }
 0x134   : > { %p1089_p2 = pnand %p1092_p1, %p1280_p6 }
 0x136   : > { %1196 = dma.done.wait (!%p1089_p2), %s755_s5, 2048  }
 0x137   : > { %1198 = vsyncadd (!%p1089_p2), %s755_s5, 4294965248  ;;  %p13_p3 = scmp.ge.s32.totalorder %s1263_s18, 4   ;;  %s1448_s12 = smov %s1205_s13 }
 0x138   : > { %s1449_s13 = smov %s1209_s14  ;;  %s1450_s14 = smov %s1274_s21 }
 0x139   : > { %s1451_s15 = smov %s1263_s18  ;;  %15 = sbr.rel (!%p13_p3) target bundleno = 3 (0x3), region = 67 }
 0x140   :  { %760 = vsyncpa [#allocation3], 1 }
 0x141   :  { %762 = vsyncpa [#allocation3 + $0x1], 1 }

</bundles_post_ra>
